<compile_context>
chip_gen: v7x
topology: tpu7x:2x2x1
jax: 0.10.0
libtpu: 0.0.40
codegen_flags: <defaults>
</compile_context>

<pallas_src>
import functools

import jax
import jax.numpy as jnp
from jax.experimental import pallas as pl
from jax.experimental.pallas import tpu as pltpu


def _round_up(a, m):
    return -(-a // m) * m


def _node_aggr_att_kernel(zezl_ref, ezl_ref, exlT_ref, o_ref, *, heads, final_act):
    """One (B tile, N tile) block.

    zezl_ref : (heads, TB, Dout)   z * exp(zlogit - zmax)   (B tile)
    ezl_ref  : (heads, TB, Dout)   exp(zlogit - zmax)       (B tile)
    exlT_ref : (heads, Dout, TN)   exp(xlogit - xmax)^T     (N tile, lane-dense on N)
    o_ref    : (heads, TB, TN)     out[h, b, n]             (lane-dense on N)
    """

    def head_out(h):
        rhs = exlT_ref[h]                                           # (Dout, TN)
        num = jnp.dot(zezl_ref[h], rhs, preferred_element_type=jnp.float32)
        den = jnp.dot(ezl_ref[h], rhs, preferred_element_type=jnp.float32)
        return num * pl.reciprocal(den, approx=True)                # (TB, TN)

    if final_act == 'softmax':
        a = [head_out(h) for h in range(heads)]
        if heads == 2:
            # softmax over 2 heads == sigmoid of the difference (one EUP op).
            p0 = jax.nn.sigmoid(a[0] - a[1])
            o_ref[0] = p0.astype(o_ref.dtype)
            o_ref[1] = (1.0 - p0).astype(o_ref.dtype)
        else:
            mx = functools.reduce(jnp.maximum, a)
            es = [jnp.exp(v - mx) for v in a]
            inv = pl.reciprocal(functools.reduce(jnp.add, es), approx=True)
            for h in range(heads):
                o_ref[h] = (es[h] * inv).astype(o_ref.dtype)
    else:
        for h in range(heads):        # store inside the loop -> bounded live range
            oh = head_out(h)
            if final_act == 'relu':
                oh = jnp.maximum(oh, 0.0)
            elif final_act == 'sigmoid':
                oh = jax.nn.sigmoid(oh)
            o_ref[h] = oh.astype(o_ref.dtype)


def node_aggr_att(z, x, W, b, *, heads, output_size, final_act=None):
    """Pallas implementation of NodeAggrATT.forward(z, x).

    z: (B, Dz), x: (N, Dx), W: (heads*output_size, Dz+Dx), b: (heads*output_size,)
    Returns (B, N, heads).
    """
    B, Dz = z.shape
    N, Dx = x.shape
    Din = Dz + Dx
    HD = heads * output_size
    assert W.shape == (HD, Din), W.shape
    assert b.shape == (HD,), b.shape
    assert output_size == Dz, \
        "einsum 'bnd,bndm->bnm' requires output_size == z feature dim"

    f32 = jnp.float32
    zf = z.astype(f32)
    xf = x.astype(f32)

    # torch `.view(B, N, -1, heads)` reads column d*heads + h, so the head-major
    # row (h, d) of the Linear is W[d*heads + h].
    W3 = jnp.transpose(W.reshape(output_size, heads, Din), (1, 0, 2)).astype(f32)  # (H,Dout,Din)
    b3 = b.reshape(output_size, heads).T.astype(f32)                               # (H,Dout)

    prec = jax.lax.Precision.HIGH     # bf16x3; HIGHEST's 6-pass emulation is overkill
    # Hoisted logits — the B*N "repeat+cat" expansion never exists in HBM.
    # zlogit depends only on B, xlogit only on N (produced pre-transposed so the
    # kernel RHS is lane-dense on N).
    zlogit = jnp.einsum('bi,hdi->hbd', zf, W3[:, :, :Dz], precision=prec) \
        + b3[:, None, :]                                                           # (H,B,Dout)
    xlogitT = jnp.einsum('ni,hdi->hdn', xf, W3[:, :, Dz:], precision=prec)         # (H,Dout,N)

    # exp(zl + xl) = exp(zl - zmax) * exp(xl - xmax); the shift cancels in num/den.
    ezl = jnp.exp(zlogit - jnp.max(zlogit, axis=-1, keepdims=True))                # (H,B,Dout)
    zezl = ezl * zf[None, :, :]                                                    # (H,B,Dout)
    exlT = jnp.exp(xlogitT - jnp.max(xlogitT, axis=1, keepdims=True))              # (H,Dout,N)

    # Tile selection: TB on sublanes (multiple of 8), TN on lanes (multiple of
    # 128 -> unmasked dense stores).  heads*TB*TN*4 B <= ~1 MiB per output tile.
    if B <= 256:
        TB = _round_up(B, 8); B_pad = TB
    else:
        TB = 256; B_pad = _round_up(B, TB)
    if N <= 512:
        TN = _round_up(N, 128); N_pad = TN
    else:
        TN = 512; N_pad = _round_up(N, TN)

    pb, pn = B_pad - B, N_pad - N
    # Pad the exp'd factors with ones so `den` stays > 0 in padded rows/cols
    # (no inf/NaN even in the sliced-off region).
    zezl_p = jnp.pad(zezl, ((0, 0), (0, pb), (0, 0)))
    ezl_p = jnp.pad(ezl, ((0, 0), (0, pb), (0, 0)), constant_values=1.0)
    exlT_p = jnp.pad(exlT, ((0, 0), (0, 0), (0, pn)), constant_values=1.0)

    kern = functools.partial(_node_aggr_att_kernel, heads=heads, final_act=final_act)

    # Grid: N tiles outer (slow), B tiles inner (fast) -> the larger exl tile is
    # kept resident across the inner loop; only the small z-side tiles re-stream.
    out_hm = pl.pallas_call(
        kern,
        out_shape=jax.ShapeDtypeStruct((heads, B_pad, N_pad), f32),
        grid=(N_pad // TN, B_pad // TB),
        in_specs=[
            pl.BlockSpec((heads, TB, output_size), lambda ni, bi: (0, bi, 0)),  # z*e^zl
            pl.BlockSpec((heads, TB, output_size), lambda ni, bi: (0, bi, 0)),  # e^zl
            pl.BlockSpec((heads, output_size, TN), lambda ni, bi: (0, 0, ni)),  # e^xl^T
        ],
        out_specs=pl.BlockSpec((heads, TB, TN), lambda ni, bi: (0, bi, ni)),
        compiler_params=pltpu.CompilerParams(
            dimension_semantics=("parallel", "parallel")),
    )(zezl_p, ezl_p, exlT_p)

    # Kernel emits lane-dense (heads, B, N); the module contract is (B, N, heads).
    # TODO(synk): skip this transpose if the downstream consumer can take the
    # head-major layout directly.
    return jnp.transpose(out_hm, (1, 2, 0))[:B, :N, :]


def ref_forward(z, x, W, b, heads, final_act):
    """Pure-JAX reference mirroring the PyTorch forward exactly."""
    B, Dz = z.shape
    N, Dx = x.shape
    zz = jnp.broadcast_to(z[:, None, :], (B, N, Dz))
    xx = jnp.broadcast_to(x[None, :, :], (B, N, Dx))
    inp = jnp.concatenate([zz, xx], axis=-1)
    alpha = jnp.einsum('bni,oi->bno', inp, W,
                       precision=jax.lax.Precision.HIGHEST) + b
    alpha = alpha.reshape(B, N, -1, heads)                # view(..., -1, heads)
    alpha = jax.nn.softmax(alpha, axis=2)                 # Softmax(dim=2)
    out = jnp.einsum('bnd,bndm->bnm', zz, alpha,
                     precision=jax.lax.Precision.HIGHEST)
    if final_act == 'relu':
        out = jax.nn.relu(out)
    elif final_act == 'sigmoid':
        out = jax.nn.sigmoid(out)
    elif final_act == 'softmax':
        out = jax.nn.softmax(out, axis=-1)
    return out


if __name__ == "__main__":
    B, N = 2, 8
    Dz = 32                    # z feature dim == output_size (required by einsum)
    Dx = 32
    heads = 2
    input_size = Dz + Dx       # 64
    output_size = Dz           # 32

    key = jax.random.PRNGKey(0)
    kz, kx, kw, kb = jax.random.split(key, 4)
    z = jax.random.normal(kz, (B, Dz), jnp.float32)
    x = jax.random.normal(kx, (N, Dx), jnp.float32)
    # att = MLP([input_size, heads*output_size], final_act=None) == single Linear
    W = jax.random.normal(kw, (heads * output_size, input_size), jnp.float32) * 0.1
    b = jax.random.normal(kb, (heads * output_size,), jnp.float32) * 0.1

    for act in ('relu', None, 'sigmoid', 'softmax'):
        out = node_aggr_att(z, x, W, b, heads=heads, output_size=output_size,
                            final_act=act)
        out = jax.block_until_ready(out)
        ref = ref_forward(z, x, W, b, heads, act)
        assert out.shape == (B, N, heads), out.shape
        assert jnp.allclose(out, ref, atol=2e-3, rtol=2e-3), (act, out, ref)

    print("KERNEL_OK")
</pallas_src>

<mosaic_0001>
module attributes {stable_mosaic.version = 11 : i64} {
  func.func @_node_aggr_att_kernel(%arg0: i32, %arg1: i32, %arg2: memref<2x8x32xf32, #tpu.memory_space<vmem>>, %arg3: memref<2x8x32xf32, #tpu.memory_space<vmem>>, %arg4: memref<2x32x128xf32, #tpu.memory_space<vmem>>, %arg5: memref<2x8x128xf32, #tpu.memory_space<vmem>>) attributes {dimension_semantics = [#tpu.dimension_semantics<parallel>, #tpu.dimension_semantics<parallel>], iteration_bounds = array<i64: 1, 1>, scalar_prefetch = 0 : i64, scratch_operands = 0 : i64, tpu.core_type = #tpu.core_type<tc>, window_params = [{transform_indices = @transform_0, window_bounds = array<i64: 2, 8, 32>}, {transform_indices = @transform_1, window_bounds = array<i64: 2, 8, 32>}, {transform_indices = @transform_2, window_bounds = array<i64: 2, 32, 128>}, {transform_indices = @transform_3, window_bounds = array<i64: 2, 8, 128>}]} {
    %c0 = arith.constant 0 : index
    %c0_0 = arith.constant 0 : index
    %c0_1 = arith.constant 0 : index
    %0 = vector.load %arg4[%c0, %c0_0, %c0_1] : memref<2x32x128xf32, #tpu.memory_space<vmem>>, vector<1x32x128xf32>
    %1 = vector.shape_cast %0 : vector<1x32x128xf32> to vector<32x128xf32>
    %c0_2 = arith.constant 0 : index
    %c0_3 = arith.constant 0 : index
    %c0_4 = arith.constant 0 : index
    %2 = vector.load %arg2[%c0_2, %c0_3, %c0_4] : memref<2x8x32xf32, #tpu.memory_space<vmem>>, vector<1x8x32xf32>
    %3 = vector.shape_cast %2 : vector<1x8x32xf32> to vector<8x32xf32>
    %cst = arith.constant dense<0.000000e+00> : vector<8x128xf32>
    %4 = tpu.matmul %3, %1, %cst {dimension_numbers = #tpu.dot_dimension_numbers<[1], [0], [0], [1], [0, 0, 1, 1], [], []>} : vector<8x32xf32>, vector<32x128xf32>, vector<8x128xf32> -> vector<8x128xf32>
    %c0_5 = arith.constant 0 : index
    %c0_6 = arith.constant 0 : index
    %c0_7 = arith.constant 0 : index
    %5 = vector.load %arg3[%c0_5, %c0_6, %c0_7] : memref<2x8x32xf32, #tpu.memory_space<vmem>>, vector<1x8x32xf32>
    %6 = vector.shape_cast %5 : vector<1x8x32xf32> to vector<8x32xf32>
    %cst_8 = arith.constant dense<0.000000e+00> : vector<8x128xf32>
    %7 = tpu.matmul %6, %1, %cst_8 {dimension_numbers = #tpu.dot_dimension_numbers<[1], [0], [0], [1], [0, 0, 1, 1], [], []>} : vector<8x32xf32>, vector<32x128xf32>, vector<8x128xf32> -> vector<8x128xf32>
    %8 = tpu.reciprocal %7 {approx = true} : vector<8x128xf32> -> vector<8x128xf32>
    %9 = arith.mulf %4, %8 : vector<8x128xf32>
    %cst_9 = arith.constant 0.000000e+00 : f32
    %10 = vector.broadcast %cst_9 : f32 to vector<8x128xf32>
    %11 = arith.maximumf %9, %10 : vector<8x128xf32>
    %c0_10 = arith.constant 0 : index
    %c0_11 = arith.constant 0 : index
    %c0_12 = arith.constant 0 : index
    %12 = vector.load %arg5[%c0_10, %c0_11, %c0_12] : memref<2x8x128xf32, #tpu.memory_space<vmem>>, vector<1x8x128xf32>
    %13 = vector.shape_cast %12 : vector<1x8x128xf32> to vector<8x128xf32>
    %14 = vector.shape_cast %11 : vector<8x128xf32> to vector<1x8x128xf32>
    tpu.vector_store %arg5[%c0_10, %c0_11, %c0_12], %14 {strides = array<i32>} : memref<2x8x128xf32, #tpu.memory_space<vmem>>, vector<1x8x128xf32>,
    %c1 = arith.constant 1 : index
    %c0_13 = arith.constant 0 : index
    %c0_14 = arith.constant 0 : index
    %15 = vector.load %arg4[%c1, %c0_13, %c0_14] : memref<2x32x128xf32, #tpu.memory_space<vmem>>, vector<1x32x128xf32>
    %16 = vector.shape_cast %15 : vector<1x32x128xf32> to vector<32x128xf32>
    %c1_15 = arith.constant 1 : index
    %c0_16 = arith.constant 0 : index
    %c0_17 = arith.constant 0 : index
    %17 = vector.load %arg2[%c1_15, %c0_16, %c0_17] : memref<2x8x32xf32, #tpu.memory_space<vmem>>, vector<1x8x32xf32>
    %18 = vector.shape_cast %17 : vector<1x8x32xf32> to vector<8x32xf32>
    %cst_18 = arith.constant dense<0.000000e+00> : vector<8x128xf32>
    %19 = tpu.matmul %18, %16, %cst_18 {dimension_numbers = #tpu.dot_dimension_numbers<[1], [0], [0], [1], [0, 0, 1, 1], [], []>} : vector<8x32xf32>, vector<32x128xf32>, vector<8x128xf32> -> vector<8x128xf32>
    %c1_19 = arith.constant 1 : index
    %c0_20 = arith.constant 0 : index
    %c0_21 = arith.constant 0 : index
    %20 = vector.load %arg3[%c1_19, %c0_20, %c0_21] : memref<2x8x32xf32, #tpu.memory_space<vmem>>, vector<1x8x32xf32>
    %21 = vector.shape_cast %20 : vector<1x8x32xf32> to vector<8x32xf32>
    %cst_22 = arith.constant dense<0.000000e+00> : vector<8x128xf32>
    %22 = tpu.matmul %21, %16, %cst_22 {dimension_numbers = #tpu.dot_dimension_numbers<[1], [0], [0], [1], [0, 0, 1, 1], [], []>} : vector<8x32xf32>, vector<32x128xf32>, vector<8x128xf32> -> vector<8x128xf32>
    %23 = tpu.reciprocal %22 {approx = true} : vector<8x128xf32> -> vector<8x128xf32>
    %24 = arith.mulf %19, %23 : vector<8x128xf32>
    %cst_23 = arith.constant 0.000000e+00 : f32
    %25 = vector.broadcast %cst_23 : f32 to vector<8x128xf32>
    %26 = arith.maximumf %24, %25 : vector<8x128xf32>
    %c1_24 = arith.constant 1 : index
    %c0_25 = arith.constant 0 : index
    %c0_26 = arith.constant 0 : index
    %27 = vector.load %arg5[%c1_24, %c0_25, %c0_26] : memref<2x8x128xf32, #tpu.memory_space<vmem>>, vector<1x8x128xf32>
    %28 = vector.shape_cast %27 : vector<1x8x128xf32> to vector<8x128xf32>
    %29 = vector.shape_cast %26 : vector<8x128xf32> to vector<1x8x128xf32>
    tpu.vector_store %arg5[%c1_24, %c0_25, %c0_26], %29 {strides = array<i32>} : memref<2x8x128xf32, #tpu.memory_space<vmem>>, vector<1x8x128xf32>,
    return
  }
  func.func @transform_0(%arg0: i32, %arg1: i32) -> (i32, i32, i32) {
    %c0_i32 = arith.constant 0 : i32
    %c0_i32_0 = arith.constant 0 : i32
    %c0_i32_1 = arith.constant 0 : i32
    return %c0_i32, %arg1, %c0_i32_0 : i32, i32, i32
  }
  func.func @transform_1(%arg0: i32, %arg1: i32) -> (i32, i32, i32) {
    %c0_i32 = arith.constant 0 : i32
    %c0_i32_0 = arith.constant 0 : i32
    %c0_i32_1 = arith.constant 0 : i32
    return %c0_i32, %arg1, %c0_i32_0 : i32, i32, i32
  }
  func.func @transform_2(%arg0: i32, %arg1: i32) -> (i32, i32, i32) {
    %c0_i32 = arith.constant 0 : i32
    %c0_i32_0 = arith.constant 0 : i32
    %c0_i32_1 = arith.constant 0 : i32
    return %c0_i32, %c0_i32_0, %arg0 : i32, i32, i32
  }
  func.func @transform_3(%arg0: i32, %arg1: i32) -> (i32, i32, i32) {
    %c0_i32 = arith.constant 0 : i32
    %c0_i32_0 = arith.constant 0 : i32
    return %c0_i32, %arg1, %arg0 : i32, i32, i32
  }
}

</mosaic_0001>

<bundles_post_ra>
// kernel: tpu_custom_call.1
= control target key start
LH: loop header
LB: loop body
LE: loop exit
PB: predicated region body
PF: predicated region fallthrough
CT: control target
= control target key end

     0   :  { %8 = vsyncpa [#allocation3], 0  ;;  %s694_s0 = inlined_call_operand.hbm [shape: f32[2,8,32], index: 0, kind: input, shape index: {}]   ;;  %s695_s1 = inlined_call_operand.hbm [shape: f32[2,8,32], index: 1, kind: input, shape index: {}]   ;;  %s696_s2 = inlined_call_operand.hbm [shape: f32[2,32,128], index: 2, kind: input, shape index: {}]   ;;  %s697_s3 = inlined_call_operand.hbm [shape: f32[2,8,128], index: 3, kind: output, shape index: {}]  }
   0x1   :  { %9 = vsyncpa [#allocation6], 0 }
   0x2   :  { %10 = vsyncpa [#allocation4], 0  ;;  %s590_s12 = smov [#allocation5]   ;;  %s591_s14 = smov [#allocation2]  }
   0x3   :  { %s28_s13 = sshll.u32 %s590_s12, 4  ;;  %s16_s15 = sshll.u32 %s591_s14, 4  ;;  %s29_s13 = int_to_ptr.vmem [resolvable:$true] %s28_s13  ;;  %s619_s15 = int_to_ptr.vmem [resolvable:$true] %s16_s15 }
   0x4   :  { %s496_s18 = scalar_lea.hbm %s695_s1, 256 }
   0x5   :  { %p497_p0 = scmp.ne.s32.totalorder %s695_s1, %s496_s18  ;;  %p500_p1 = scmp.lt.u32.totalorder %s496_s18, %s695_s1 }
   0x7   :  { %p502_p2 = pnand %p500_p1, %p497_p0 }
   0x9   :  { %505 = shalt.err (!%p502_p2)
}
   0xa   :  { %s506_s23 = scalar_lea.vmem %s29_s13, 256  ;;  %p511_p4 = scmp.lt.s32.totalorder %s29_s13, %s29_s13 }
   0xb   :  { %p507_p3 = scmp.ne.s32.totalorder %s29_s13, %s506_s23  ;;  %p512_p5 = scmp.lt.s32.totalorder %s506_s23, %s506_s23 }
   0xd   :  { %p513_p6 = por %p512_p5, %p511_p4 }
   0xf   :  { %p514_p7 = pnand %p513_p6, %p507_p3 }
  0x11   :  { %517 = shalt.err (!%p514_p7)
}
  0x12   :  { %s592_s24 = smov 128   ;;  %s593_s25 = smov 8  }
  0x13   :  { %34 = dma.hbm_to_vmem [thread:$0]  %s695_s1, 256, %s29_s13, [#allocation6], %s592_s24, %s592_s24, %s593_s25  }
  0x14   :  { %s518_s30 = scalar_lea.hbm %s694_s0, 256 }
  0x15   :  { %p519_p8 = scmp.ne.s32.totalorder %s694_s0, %s518_s30  ;;  %p522_p9 = scmp.lt.u32.totalorder %s518_s30, %s694_s0 }
  0x17   :  { %p524_p10 = pnand %p522_p9, %p519_p8 }
  0x19   :  { %527 = shalt.err (!%p524_p10)
}
  0x1a   :  { %s528_s8 = scalar_lea.vmem %s619_s15, 256  ;;  %p533_p12 = scmp.lt.s32.totalorder %s619_s15, %s619_s15 }
  0x1b   :  { %p529_p11 = scmp.ne.s32.totalorder %s619_s15, %s528_s8  ;;  %p534_p13 = scmp.lt.s32.totalorder %s528_s8, %s528_s8 }
  0x1d   :  { %p535_p0 = por %p534_p13, %p533_p12 }
  0x1f   :  { %p536_p1 = pnand %p535_p0, %p529_p11 }
  0x21   :  { %539 = shalt.err (!%p536_p1)
}
  0x22   :  { %22 = dma.hbm_to_vmem [thread:$0]  %s694_s0, 256, %s619_s15, [#allocation3], %s592_s24, %s592_s24, %s593_s25  }
  0x23   :  { %s594_s10 = smov [#allocation7]   ;;  %s540_s14 = scalar_lea.hbm %s696_s2, 1024 }
  0x24   :  { %s40_s11 = sshll.u32 %s594_s10, 4  ;;  %p541_p2 = scmp.ne.s32.totalorder %s696_s2, %s540_s14  ;;  %s41_s11 = int_to_ptr.vmem [resolvable:$true] %s40_s11 }
  0x25   :  { %p544_p3 = scmp.lt.u32.totalorder %s540_s14, %s696_s2 }
  0x27   :  { %p546_p4 = pnand %p544_p3, %p541_p2 }
  0x29   :  { %549 = shalt.err (!%p546_p4)
}
  0x2a   :  { %s550_s20 = scalar_lea.vmem %s41_s11, 1024  ;;  %p555_p6 = scmp.lt.s32.totalorder %s41_s11, %s41_s11 }
  0x2b   :  { %p551_p5 = scmp.ne.s32.totalorder %s41_s11, %s550_s20  ;;  %p556_p7 = scmp.lt.s32.totalorder %s550_s20, %s550_s20 }
  0x2d   :  { %p557_p8 = por %p556_p7, %p555_p6 }
  0x2f   :  { %p558_p9 = pnand %p557_p8, %p551_p5 }
  0x31   :  { %561 = shalt.err (!%p558_p9)
}
  0x32   :  { %46 = dma.hbm_to_vmem [thread:$0]  %s696_s2, 1024, %s41_s11, [#allocation6], %s592_s24, %s592_s24, %s593_s25  }
  0x33   :  { %584 = dma.done.wait [#allocation3], 256  }
  0x34   :  { %585 = vsyncadd [#allocation3], 4294967040 }
  0x35   :  { %586 = dma.done.wait [#allocation6], 1280  }
  0x36   :  { %587 = vsyncadd [#allocation6], 4294966016  ;;  %v595_v0 = vmov 0.0|0.0   ;;  %vm596_vm0 = vmmov 0   ;;  %v597_v1 = vmov 0.0   ;;  %v56_v2 = vld [vmem:[#allocation7] sm:$0xff] }
  0x37   :  { %465 = vmatprep.subr.bf16.mxu1 %v595_v0  ;;  %434 = vmatprep.mubr.msk.f32.mxu1 %vm596_vm0, %v597_v1  ;;  %v57_v3 = vld [vmem:[#allocation7 + $0x8] sm:$0xff]  ;;  %v58_v4 = vld [vmem:[#allocation7 + $0x10] sm:$0xff]  ;;  %v59_v6 = vld [vmem:[#allocation7 + $0x18] sm:$0xff]  ;;  %vm61_vm1 = vcmask 261120   ;;  %s598_s2 = smov [#allocation8]  }
  0x38   :  { %459 = vmatprep.subr.bf16.mxu0 %v595_v0  ;;  %423 = vmatprep.mubr.msk.f32.mxu0 %vm596_vm0, %v597_v1  ;;  %v460_v5 = vpack.c.bf16 %v57_v3, %v56_v2  ;;  %v463_v7 = vpack.c.bf16 %v59_v6, %v58_v4  ;;  %v214_v8 = vld [vmem:[#allocation7 + $0x20] sm:$0xff]  ;;  %v215_v9 = vld [vmem:[#allocation7 + $0x28] sm:$0xff]  ;;  %v135_v10 = vld [vmem:[#allocation5] sm:$0xff]  ;;  %s378_s21 = sshll.u32 %s598_s2, 4  ;;  %s379_s21 = int_to_ptr.vmem [resolvable:$true] %s378_s21 }
  0x39   :  { %v472_v11 = vpack.c.bf16 %v215_v9, %v214_v8  ;;  %v60_v12 = vld [vmem:[#allocation2] sm:$0xff]  ;;  %v216_v13 = vld [vmem:[#allocation7 + $0x30] sm:$0xff]  ;;  %v217_v14 = vld [vmem:[#allocation7 + $0x38] sm:$0xff]  ;;  %s562_s22 = scalar_lea.vmem %s379_s21, 256  ;;  %p567_p11 = scmp.lt.s32.totalorder %s379_s21, %s379_s21 }
  0x3a   :  { %467 = vmatpush3.bf16.msra.mxu1 %v460_v5  ;;  %461 = vmatpush3.bf16.msra.mxu0 %v460_v5  ;;  %v475_v15 = vpack.c.bf16 %v217_v14, %v216_v13  ;;  %v294_v16 = vld [vmem:[#allocation5 + $0x8] sm:$0xff]  ;;  %v219_v17 = vld [vmem:[#allocation2 + $0x8] sm:$0xff]  ;;  %p563_p10 = scmp.ne.s32.totalorder %s379_s21, %s562_s22  ;;  %p568_p12 = scmp.lt.s32.totalorder %s562_s22, %s562_s22 }
  0x3b   :  { %468 = vmatprep.subr.bf16.mxu1 %v595_v0  ;;  %462 = vmatprep.subr.bf16.mxu0 %v595_v0 }
  0x3c   :  { %p569_p13 = por %p568_p12, %p567_p11 }
  0x3e   :  { %470 = vmatpush3.bf16.msra.mxu1 %v463_v7  ;;  %464 = vmatpush3.bf16.msra.mxu0 %v463_v7  ;;  %p570_p0 = pnand %p569_p13, %p563_p10 }
  0x3f   :  { %477 = vmatprep.subr.bf16.mxu1 %v595_v0  ;;  %471 = vmatprep.subr.bf16.mxu0 %v595_v0 }
  0x41   :  { %435 = vmatmul.mubr.msk.f32.vlgmr.msra.gmra.mrb[0].mxu1 %vm61_vm1, %v135_v10  ;;  %424 = vmatmul.mubr.msk.f32.vlgmr.msra.gmra.mrb[0].mxu0 %vm61_vm1, %v60_v12 }
  0x42   :  { %479 = vmatpush3.bf16.msra.mxu1 %v472_v11  ;;  %456 = vmatprep.mubr.msk.f32.mxu1 %vm596_vm0, %v597_v1 }
  0x43   :  { %480 = vmatprep.subr.bf16.mxu1 %v595_v0  ;;  %473 = vmatpush3.bf16.msra.mxu0 %v472_v11 }
  0x44   :  { %474 = vmatprep.subr.bf16.mxu0 %v595_v0  ;;  %445 = vmatprep.mubr.msk.f32.mxu0 %vm596_vm0, %v597_v1 }
  0x46   :  { %482 = vmatpush3.bf16.msra.mxu1 %v475_v15 }
  0x47   :  { %476 = vmatpush3.bf16.msra.mxu0 %v475_v15 }
  0x49   :  { %457 = vmatmul.mubr.msk.f32.vlgmr.msra.gmra.mrb[2].mxu1 %vm61_vm1, %v294_v16 }
  0x4a   :  { %446 = vmatmul.mubr.msk.f32.vlgmr.msra.gmra.mrb[2].mxu0 %vm61_vm1, %v219_v17 }
 0x114   :  { %v205_v18 = vpop.f32.mrb[0].mxu1  ;;  %v131_v19 = vpop.f32.mrb[0].mxu0 }
 0x115   :  { %492 = vrcp.f32 %v205_v18  ;;  %v436_v20 = vpop.f32.mrb[1].mxu1  ;;  %v425_v21 = vpop.f32.mrb[1].mxu0 }
 0x11c   :  { %v364_v22 = vpop.f32.mrb[2].mxu1 }
 0x11d   :  { %494 = vrcp.f32 %v364_v22  ;;  %v458_v23 = vpop.f32.mrb[3].mxu1  ;;  %v289_v24 = vpop.f32.mrb[2].mxu0 }
 0x11e   :  { %v447_v25 = vpop.f32.mrb[3].mxu0 }
 0x11f   :  { %v493_v26 = vpop.eup %492 }
 0x120   :  { %v210_v27 = vmul.f32 %v493_v26, %v131_v19 }
 0x122   :  { %v211_v28 = vmax.f32 %v210_v27, 0.0 }
 0x124   :  { %212 = vst [vmem:[#allocation8] sm:$0xff] %v211_v28 }
 0x127   :  { %v495_v29 = vpop.eup %494 }
 0x128   :  { %v369_v30 = vmul.f32 %v495_v29, %v289_v24 }
 0x12a   :  { %v370_v31 = vmax.f32 %v369_v30, 0.0 }
 0x12c   :  { %372 = vst [vmem:[#allocation8 + $0x8] sm:$0xff] %v370_v31 }
 0x12d   :  { %573 = shalt.err (!%p570_p0)
}
 0x12e   :  { %s574_s27 = scalar_lea.hbm %s697_s3, 256 }
 0x12f   :  { %p575_p1 = scmp.ne.s32.totalorder %s697_s3, %s574_s27  ;;  %p578_p2 = scmp.lt.u32.totalorder %s574_s27, %s697_s3 }
 0x131   :  { %p580_p3 = pnand %p578_p2, %p575_p1 }
 0x133   :  { %583 = shalt.err (!%p580_p3)
}
 0x134   :  { %384 = dma.vmem_to_hbm [thread:$0]  %s379_s21, 256, %s697_s3, [#allocation4], %s592_s24, %s592_s24, %s593_s25  }
 0x135   :  { %588 = dma.done.wait [#allocation4], 256  }
 0x136   :  { %589 = vsyncadd [#allocation4], 4294967040 }
 0x137   :  { %388 = vsyncpa [#allocation3], 1 }
 0x138   :  { %389 = vsyncpa [#allocation6], 1 }
 0x139   :  { %390 = vsyncpa [#allocation4], 1 }

</bundles_post_ra>
